<compile_context>
chip_gen: v5e
topology: v5e:2x2
jax: 0.10.0
libtpu: 0.0.40
codegen_flags: <defaults>
</compile_context>

<pallas_src>
import jax
import jax.numpy as jnp
from jax.experimental import pallas as pl
from jax.experimental.pallas import tpu as pltpu

Z_DIM = 6      # input (latent) dim
N_HID = 32     # hidden dim
OUT_DIM = 1    # real output width (single sigmoid logit)
OUT_PAD = 128  # lane-dense padded output width
P_DROP = 0.1


def _sigmoid(x):
    return 1.0 / (1.0 + jnp.exp(-x))


# ----------------------------------------------------------------------------
# Kernels
# ----------------------------------------------------------------------------
def _dnet_eval_kernel(x_ref, w1_ref, b1_ref, w2_ref, b2_ref, w3_ref, b3_ref,
                      o_ref):
    """Eval mode: F.dropout(training=False) is the identity."""
    h = jnp.dot(x_ref[...], w1_ref[...],
                preferred_element_type=jnp.float32) + b1_ref[...]
    h = jnp.maximum(h, 0.0)
    h = jnp.dot(h.astype(w2_ref.dtype), w2_ref[...],
                preferred_element_type=jnp.float32) + b2_ref[...]
    h = jnp.maximum(h, 0.0)
    logits = jnp.dot(h.astype(w3_ref.dtype), w3_ref[...],
                     preferred_element_type=jnp.float32) + b3_ref[...]
    o_ref[...] = _sigmoid(logits).astype(o_ref.dtype)


def _dnet_train_kernel(x_ref, w1_ref, b1_ref, w2_ref, b2_ref, w3_ref, b3_ref,
                       m1_ref, m2_ref, o_ref):
    """Training mode: dropout applied to linear outputs (PyTorch order:
    dropout then ReLU).  m*_ref hold pre-scaled keep masks: 0 or 1/(1-p)."""
    h = jnp.dot(x_ref[...], w1_ref[...],
                preferred_element_type=jnp.float32) + b1_ref[...]
    h = h * m1_ref[...]
    h = jnp.maximum(h, 0.0)
    h = jnp.dot(h.astype(w2_ref.dtype), w2_ref[...],
                preferred_element_type=jnp.float32) + b2_ref[...]
    h = h * m2_ref[...]
    h = jnp.maximum(h, 0.0)
    logits = jnp.dot(h.astype(w3_ref.dtype), w3_ref[...],
                     preferred_element_type=jnp.float32) + b3_ref[...]
    o_ref[...] = _sigmoid(logits).astype(o_ref.dtype)


# ----------------------------------------------------------------------------
# Wrapper
# ----------------------------------------------------------------------------
def _round_up(n, m):
    return ((n + m - 1) // m) * m


def d_net_gauss_forward(params, x, *, training=False, key=None, tile_b=512):
    """Pallas implementation of D_net_gauss.forward.

    Batch is tiled along a 1-D "parallel" grid; weights/biases use constant
    index maps so they stay resident in VMEM across grid steps.  The final
    layer is zero-padded from 1 to 128 output columns for lane-dense stores;
    the logical (batch, 1) output is sliced out afterwards.
    """
    w1, b1, w2, b2, w3, b3 = params
    batch = x.shape[0]

    tile_b = min(tile_b, _round_up(batch, 8))      # multiple of 8, VMEM-safe
    padded = _round_up(batch, tile_b)
    grid = (padded // tile_b,)

    if padded != batch:
        x = jnp.pad(x, ((0, padded - batch), (0, 0)))

    # bf16 operands into the MXU; biases / accumulation / elementwise stay f32.
    x_bf = x.astype(jnp.bfloat16)
    w1_bf = w1.astype(jnp.bfloat16)
    w2_bf = w2.astype(jnp.bfloat16)
    # Lane-dense output: pad final layer from 1 -> 128 columns (zeros).
    w3_p = jnp.zeros((N_HID, OUT_PAD), jnp.bfloat16).at[:, :OUT_DIM].set(
        w3.astype(jnp.bfloat16))
    b3_p = jnp.zeros((1, OUT_PAD), jnp.float32).at[:, :OUT_DIM].set(b3)

    x_spec = pl.BlockSpec((tile_b, Z_DIM), lambda i: (i, 0))
    out_spec = pl.BlockSpec((tile_b, OUT_PAD), lambda i: (i, 0))
    res = lambda shape: pl.BlockSpec(shape, lambda i: (0, 0))  # resident
    common_specs = [
        x_spec,
        res((Z_DIM, N_HID)), res((1, N_HID)),
        res((N_HID, N_HID)), res((1, N_HID)),
        res((N_HID, OUT_PAD)), res((1, OUT_PAD)),
    ]
    out_shape = jax.ShapeDtypeStruct((padded, OUT_PAD), jnp.float32)

    flops = 2 * padded * (Z_DIM * N_HID + N_HID * N_HID + N_HID * OUT_PAD)
    bytes_accessed = (padded * Z_DIM * 2 + padded * OUT_PAD * 4
                      + (w1_bf.size + w2_bf.size + w3_p.size) * 2
                      + (b1.size + b2.size + b3_p.size) * 4)
    cost = pl.CostEstimate(flops=flops, transcendentals=padded * OUT_PAD,
                           bytes_accessed=bytes_accessed)
    cparams = pltpu.CompilerParams(dimension_semantics=("parallel",))

    if not training:
        out = pl.pallas_call(
            _dnet_eval_kernel,
            out_shape=out_shape,
            grid=grid,
            in_specs=common_specs,
            out_specs=out_spec,
            compiler_params=cparams,
            cost_estimate=cost,
        )(x_bf, w1_bf, b1, w2_bf, b2, w3_p, b3_p)
    else:
        if key is None:
            key = jax.random.PRNGKey(0)
        k1, k2 = jax.random.split(key)
        scale = 1.0 / (1.0 - P_DROP)
        m1 = jax.random.bernoulli(
            k1, 1.0 - P_DROP, (padded, N_HID)).astype(jnp.float32) * scale
        m2 = jax.random.bernoulli(
            k2, 1.0 - P_DROP, (padded, N_HID)).astype(jnp.float32) * scale
        mask_spec = pl.BlockSpec((tile_b, N_HID), lambda i: (i, 0))
        out = pl.pallas_call(
            _dnet_train_kernel,
            out_shape=out_shape,
            grid=grid,
            in_specs=common_specs + [mask_spec, mask_spec],
            out_specs=out_spec,
            compiler_params=cparams,
            cost_estimate=cost,
        )(x_bf, w1_bf, b1, w2_bf, b2, w3_p, b3_p, m1, m2)

    return out[:batch, :OUT_DIM]


# ----------------------------------------------------------------------------
# Deterministic parameter init (PyTorch Linear-style uniform bounds)
# ----------------------------------------------------------------------------
def init_params(key):
    def linear(k, fan_in, fan_out):
        k_w, k_b = jax.random.split(k)
        bound = 1.0 / jnp.sqrt(jnp.float32(fan_in))
        w = jax.random.uniform(k_w, (fan_in, fan_out), jnp.float32,
                               -bound, bound)            # stored as (in, out)
        b = jax.random.uniform(k_b, (1, fan_out), jnp.float32, -bound, bound)
        return w, b

    k1, k2, k3 = jax.random.split(key, 3)
    w1, b1 = linear(k1, Z_DIM, N_HID)
    w2, b2 = linear(k2, N_HID, N_HID)
    w3, b3 = linear(k3, N_HID, OUT_DIM)
    return (w1, b1, w2, b2, w3, b3)


def d_net_gauss_reference(params, x):
    """Plain-JAX eval-mode reference with the same bf16 rounding of MXU
    operands that the kernel applies (dropout is identity in eval)."""
    w1, b1, w2, b2, w3, b3 = params
    f = lambda a: a.astype(jnp.bfloat16).astype(jnp.float32)
    h = jnp.maximum(f(x) @ f(w1) + b1, 0.0)
    h = jnp.maximum(f(h) @ f(w2) + b2, 0.0)
    logits = f(h) @ f(w3) + b3
    return 1.0 / (1.0 + jnp.exp(-logits))


# ----------------------------------------------------------------------------
if __name__ == "__main__":
    key = jax.random.PRNGKey(0)
    k_param, k_x, k_drop = jax.random.split(key, 3)

    params = init_params(k_param)
    batch = 16
    x = jax.random.normal(k_x, (batch, Z_DIM), dtype=jnp.float32)

    # Eval mode (dropout = identity): must match the plain-JAX reference.
    out_eval = jax.block_until_ready(
        d_net_gauss_forward(params, x, training=False))
    ref = d_net_gauss_reference(params, x)
    assert out_eval.shape == (batch, OUT_DIM)
    assert jnp.allclose(out_eval, ref, atol=1e-4, rtol=1e-4), (
        "eval mismatch, max abs err = %e"
        % float(jnp.max(jnp.abs(out_eval - ref))))

    # Training mode (host-generated pre-scaled dropout masks): run + sanity.
    out_train = jax.block_until_ready(
        d_net_gauss_forward(params, x, training=True, key=k_drop))
    assert out_train.shape == (batch, OUT_DIM)
    assert bool(jnp.all(jnp.isfinite(out_train)))
    assert bool(jnp.all((out_train > 0.0) & (out_train < 1.0)))

    print("KERNEL_OK")
</pallas_src>

<mosaic_0001>
module attributes {stable_mosaic.version = 11 : i64} {
  func.func @_dnet_eval_kernel(%arg0: i32, %arg1: memref<16x6xbf16, #tpu.memory_space<vmem>>, %arg2: memref<6x32xbf16, #tpu.memory_space<vmem>>, %arg3: memref<1x32xf32, #tpu.memory_space<vmem>>, %arg4: memref<32x32xbf16, #tpu.memory_space<vmem>>, %arg5: memref<1x32xf32, #tpu.memory_space<vmem>>, %arg6: memref<32x128xbf16, #tpu.memory_space<vmem>>, %arg7: memref<1x128xf32, #tpu.memory_space<vmem>>, %arg8: memref<16x128xf32, #tpu.memory_space<vmem>>) attributes {dimension_semantics = [#tpu.dimension_semantics<parallel>], iteration_bounds = array<i64: 1>, scalar_prefetch = 0 : i64, scratch_operands = 0 : i64, tpu.core_type = #tpu.core_type<tc>, window_params = [{transform_indices = @transform_0, window_bounds = array<i64: 16, 6>}, {pipeline_mode = #tpu.pipeline_mode<synchronous>, transform_indices = @transform_1, window_bounds = array<i64: 6, 32>}, {pipeline_mode = #tpu.pipeline_mode<synchronous>, transform_indices = @transform_2, window_bounds = array<i64: 1, 32>}, {pipeline_mode = #tpu.pipeline_mode<synchronous>, transform_indices = @transform_3, window_bounds = array<i64: 32, 32>}, {pipeline_mode = #tpu.pipeline_mode<synchronous>, transform_indices = @transform_4, window_bounds = array<i64: 1, 32>}, {pipeline_mode = #tpu.pipeline_mode<synchronous>, transform_indices = @transform_5, window_bounds = array<i64: 32, 128>}, {pipeline_mode = #tpu.pipeline_mode<synchronous>, transform_indices = @transform_6, window_bounds = array<i64: 1, 128>}, {transform_indices = @transform_7, window_bounds = array<i64: 16, 128>}]} {
    %c0 = arith.constant 0 : index
    %c0_0 = arith.constant 0 : index
    %0 = vector.load %arg1[%c0, %c0_0] : memref<16x6xbf16, #tpu.memory_space<vmem>>, vector<16x6xbf16>
    %c0_1 = arith.constant 0 : index
    %c0_2 = arith.constant 0 : index
    %1 = vector.load %arg2[%c0_1, %c0_2] : memref<6x32xbf16, #tpu.memory_space<vmem>>, vector<6x32xbf16>
    %cst = arith.constant dense<0.000000e+00> : vector<16x32xf32>
    %2 = tpu.matmul %0, %1, %cst {dimension_numbers = #tpu.dot_dimension_numbers<[1], [0], [0], [1], [0, 0, 1, 1], [], []>} : vector<16x6xbf16>, vector<6x32xbf16>, vector<16x32xf32> -> vector<16x32xf32>
    %c0_3 = arith.constant 0 : index
    %c0_4 = arith.constant 0 : index
    %3 = vector.load %arg3[%c0_3, %c0_4] : memref<1x32xf32, #tpu.memory_space<vmem>>, vector<1x32xf32>
    %4 = vector.broadcast %3 : vector<1x32xf32> to vector<16x32xf32>
    %5 = arith.addf %2, %4 : vector<16x32xf32>
    %cst_5 = arith.constant 0.000000e+00 : f32
    %6 = vector.broadcast %cst_5 : f32 to vector<16x32xf32>
    %7 = arith.maximumf %5, %6 : vector<16x32xf32>
    %8 = arith.truncf %7 : vector<16x32xf32> to vector<16x32xbf16>
    %c0_6 = arith.constant 0 : index
    %c0_7 = arith.constant 0 : index
    %9 = vector.load %arg4[%c0_6, %c0_7] : memref<32x32xbf16, #tpu.memory_space<vmem>>, vector<32x32xbf16>
    %cst_8 = arith.constant dense<0.000000e+00> : vector<16x32xf32>
    %10 = tpu.matmul %8, %9, %cst_8 {dimension_numbers = #tpu.dot_dimension_numbers<[1], [0], [0], [1], [0, 0, 1, 1], [], []>} : vector<16x32xbf16>, vector<32x32xbf16>, vector<16x32xf32> -> vector<16x32xf32>
    %c0_9 = arith.constant 0 : index
    %c0_10 = arith.constant 0 : index
    %11 = vector.load %arg5[%c0_9, %c0_10] : memref<1x32xf32, #tpu.memory_space<vmem>>, vector<1x32xf32>
    %12 = vector.broadcast %11 : vector<1x32xf32> to vector<16x32xf32>
    %13 = arith.addf %10, %12 : vector<16x32xf32>
    %cst_11 = arith.constant 0.000000e+00 : f32
    %14 = vector.broadcast %cst_11 : f32 to vector<16x32xf32>
    %15 = arith.maximumf %13, %14 : vector<16x32xf32>
    %16 = arith.truncf %15 : vector<16x32xf32> to vector<16x32xbf16>
    %c0_12 = arith.constant 0 : index
    %c0_13 = arith.constant 0 : index
    %17 = vector.load %arg6[%c0_12, %c0_13] : memref<32x128xbf16, #tpu.memory_space<vmem>>, vector<32x128xbf16>
    %cst_14 = arith.constant dense<0.000000e+00> : vector<16x128xf32>
    %18 = tpu.matmul %16, %17, %cst_14 {dimension_numbers = #tpu.dot_dimension_numbers<[1], [0], [0], [1], [0, 0, 1, 1], [], []>} : vector<16x32xbf16>, vector<32x128xbf16>, vector<16x128xf32> -> vector<16x128xf32>
    %c0_15 = arith.constant 0 : index
    %c0_16 = arith.constant 0 : index
    %19 = vector.load %arg7[%c0_15, %c0_16] : memref<1x128xf32, #tpu.memory_space<vmem>>, vector<1x128xf32>
    %20 = vector.broadcast %19 : vector<1x128xf32> to vector<16x128xf32>
    %21 = arith.addf %18, %20 : vector<16x128xf32>
    %cst_17 = arith.constant 0.000000e+00 : f32
    %22 = vector.broadcast %cst_17 : f32 to vector<16x128xf32>
    %23 = arith.subf %22, %21 : vector<16x128xf32>
    %24 = math.exp %23 : vector<16x128xf32>
    %cst_18 = arith.constant 1.000000e+00 : f32
    %25 = vector.broadcast %cst_18 : f32 to vector<16x128xf32>
    %26 = arith.addf %25, %24 : vector<16x128xf32>
    %cst_19 = arith.constant 1.000000e+00 : f32
    %27 = vector.broadcast %cst_19 : f32 to vector<16x128xf32>
    %28 = arith.divf %27, %26 : vector<16x128xf32>
    %c0_20 = arith.constant 0 : index
    %c0_21 = arith.constant 0 : index
    %29 = vector.load %arg8[%c0_20, %c0_21] : memref<16x128xf32, #tpu.memory_space<vmem>>, vector<16x128xf32>
    tpu.vector_store %arg8[%c0_20, %c0_21], %28 {strides = array<i32>} : memref<16x128xf32, #tpu.memory_space<vmem>>, vector<16x128xf32>,
    return
  }
  func.func @transform_0(%arg0: i32) -> (i32, i32) {
    %c0_i32 = arith.constant 0 : i32
    %c0_i32_0 = arith.constant 0 : i32
    return %arg0, %c0_i32 : i32, i32
  }
  func.func @transform_1(%arg0: i32) -> (i32, i32) {
    %c0_i32 = arith.constant 0 : i32
    %c0_i32_0 = arith.constant 0 : i32
    %c0_i32_1 = arith.constant 0 : i32
    return %c0_i32, %c0_i32_0 : i32, i32
  }
  func.func @transform_2(%arg0: i32) -> (i32, i32) {
    %c0_i32 = arith.constant 0 : i32
    %c0_i32_0 = arith.constant 0 : i32
    %c0_i32_1 = arith.constant 0 : i32
    return %c0_i32, %c0_i32_0 : i32, i32
  }
  func.func @transform_3(%arg0: i32) -> (i32, i32) {
    %c0_i32 = arith.constant 0 : i32
    %c0_i32_0 = arith.constant 0 : i32
    %c0_i32_1 = arith.constant 0 : i32
    return %c0_i32, %c0_i32_0 : i32, i32
  }
  func.func @transform_4(%arg0: i32) -> (i32, i32) {
    %c0_i32 = arith.constant 0 : i32
    %c0_i32_0 = arith.constant 0 : i32
    %c0_i32_1 = arith.constant 0 : i32
    return %c0_i32, %c0_i32_0 : i32, i32
  }
  func.func @transform_5(%arg0: i32) -> (i32, i32) {
    %c0_i32 = arith.constant 0 : i32
    %c0_i32_0 = arith.constant 0 : i32
    %c0_i32_1 = arith.constant 0 : i32
    return %c0_i32, %c0_i32_0 : i32, i32
  }
  func.func @transform_6(%arg0: i32) -> (i32, i32) {
    %c0_i32 = arith.constant 0 : i32
    %c0_i32_0 = arith.constant 0 : i32
    %c0_i32_1 = arith.constant 0 : i32
    return %c0_i32, %c0_i32_0 : i32, i32
  }
  func.func @transform_7(%arg0: i32) -> (i32, i32) {
    %c0_i32 = arith.constant 0 : i32
    %c0_i32_0 = arith.constant 0 : i32
    return %arg0, %c0_i32 : i32, i32
  }
}

</mosaic_0001>

<bundles_post_ra>
// kernel: tpu_custom_call.1
= control target key start
LH: loop header
LB: loop body
LE: loop exit
PB: predicated region body
PF: predicated region fallthrough
CT: control target
= control target key end

     0   :  { %12 = vsyncpa [#allocation3], 0  ;;  %s513_s0 = inlined_call_operand.vmem [shape: bf16[16,6], index: 0, kind: input, shape index: {}]   ;;  %s514_s1 = inlined_call_operand.hbm [shape: bf16[6,32], index: 1, kind: input, shape index: {}]   ;;  %s515_s2 = inlined_call_operand.hbm [shape: f32[1,32], index: 2, kind: input, shape index: {}]   ;;  %s516_s3 = inlined_call_operand.hbm [shape: bf16[32,32], index: 3, kind: input, shape index: {}]   ;;  %s517_s4 = inlined_call_operand.hbm [shape: f32[1,32], index: 4, kind: input, shape index: {}]   ;;  %s518_s5 = inlined_call_operand.vmem [shape: bf16[32,128], index: 5, kind: input, shape index: {}]   ;;  %s519_s6 = inlined_call_operand.vmem [shape: f32[1,128], index: 6, kind: input, shape index: {}]   ;;  %s520_s7 = inlined_call_operand.hbm [shape: f32[16,128], index: 7, kind: output, shape index: {}]  }
   0x1   :  { %13 = vsyncpa [#allocation6], 0 }
   0x2   :  { %14 = vsyncpa [#allocation9], 0  ;;  %s34_s26 = sshll.u32 %s515_s2, 4  ;;  %s35_s26 = int_to_ptr.hbm [resolvable:$true] %s34_s26 }
   0x3   :  { %15 = vsyncpa [#allocation4], 0  ;;  %s437_s27 = smov [#allocation5]   ;;  %s23_s8 = sshll.u32 %s514_s1, 4  ;;  %s24_s8 = int_to_ptr.hbm [resolvable:$true] %s23_s8 }
   0x4   :  { %s36_s28 = sshll.u32 %s437_s27, 4  ;;  %s438_s9 = smov [#allocation2]   ;;  %s37_s28 = int_to_ptr.vmem [resolvable:$true] %s36_s28 }
   0x5   :  { %39 = dma.hbm_to_vmem [thread:$0]  %s35_s26, 16, %s37_s28, [#allocation6]  }
   0x6   :  { %s25_s10 = sshll.u32 %s438_s9, 4  ;;  %s44_s13 = sshll.u32 %s516_s3, 4  ;;  %s26_s10 = int_to_ptr.vmem [resolvable:$true] %s25_s10  ;;  %s45_s13 = int_to_ptr.hbm [resolvable:$true] %s44_s13 }
   0x7   :  { %28 = dma.hbm_to_vmem [thread:$0]  %s24_s8, 64, %s26_s10, [#allocation3]  }
   0x8   :  { %s439_s2 = smov [#allocation7]   ;;  %s58_s17 = sshll.u32 %s517_s4, 4  ;;  %s59_s17 = int_to_ptr.hbm [resolvable:$true] %s58_s17 }
   0x9   :  { %s46_s14 = sshll.u32 %s439_s2, 4  ;;  %s440_s18 = smov 64   ;;  %s47_s14 = int_to_ptr.vmem [resolvable:$true] %s46_s14 }
   0xa   :  { %s441_s1 = smov 4   ;;  %s442_s19 = smov [#allocation8]  }
   0xb   :  { %52 = dma.hbm_to_vmem [thread:$0]  %s45_s13, 256, %s47_s14, [#allocation6], %s440_s18, %s440_s18, %s441_s1  }
   0xc   :  { %s60_s20 = sshll.u32 %s442_s19, 4  ;;  %s61_s20 = int_to_ptr.vmem [resolvable:$true] %s60_s20 }
   0xd   :  { %63 = dma.hbm_to_vmem [thread:$0]  %s59_s17, 16, %s61_s20, [#allocation9]  }
   0xe   :  { %429 = dma.done.wait [#allocation3], 64  }
   0xf   :  { %430 = vsyncadd [#allocation3], 4294967232 }
  0x10   :  { %431 = dma.done.wait [#allocation6], 272  }
  0x11   :  { %432 = vsyncadd [#allocation6], 4294967024 }
  0x12   :  { %433 = dma.done.wait [#allocation9], 16  }
  0x13   :  { %434 = vsyncadd [#allocation9], 4294967280  ;;  %vm101_vm0 = vcmask 1042432   ;;  %v87_v0 = vld [vmem:[#allocation2] sm:$0x7]  ;;  %vm97_vm1 = vcmask 48128  }
  0x14   :  { %v103_v1 = vsel %vm101_vm0, %v87_v0, 0  ;;  %v284_v2 = vld [vmem:[%s513_s0] sm:$0xff]  ;;  %v286_v3 = vld [vmem:[#allocation7 + $0x8] sm:$0xff]  ;;  %vm142_vm2 = vcmask 261120   ;;  %v299_v16 = vld [vmem:[#allocation8] ss:$0 sm:$0xff] }
  0x15   :  { %112 = vmatpush.bf16.msra.mxu0 %v103_v1  ;;  %152 = vmatpush.bf16.msra.mxu1 %v286_v3  ;;  %v285_v4 = vld [vmem:[#allocation7] sm:$0xff]  ;;  %v298_v6 = vld [vmem:[#allocation5] ss:$0 sm:$0xff]  ;;  %v300_v23 = vld [vmem:[%s519_s6] ss:$0 sm:$0xff]  ;;  %s246_s28 = sshll.u32 %s520_s7, 4  ;;  %s247_s28 = int_to_ptr.hbm [resolvable:$true] %s246_s28 }
  0x16   :  { %v288_v13 = vld [vmem:[%s518_s5 + $0x8] sm:$0xff]  ;;  %v287_v14 = vld [vmem:[%s518_s5] sm:$0xff]  ;;  %s443_s5 = smov [#allocation10]   ;;  %s444_s29 = smov 128  }
  0x17   :  { %192 = vmatpush.bf16.msra.mxu2 %v288_v13  ;;  %s244_s6 = sshll.u32 %s443_s5, 4  ;;  %s445_s30 = smov 8   ;;  %s245_s6 = int_to_ptr.vmem [resolvable:$true] %s244_s6 }
  0x18   :  { %265 = vmatmul.msk.bf16.vlgmr.msra.gmra.mxu0 %vm97_vm1, %v284_v2 }
  0x19   :  { %153 = vmatpush.bf16.msra.mxu1 %v285_v4 }
  0x1b   :  { %193 = vmatpush.bf16.msra.mxu2 %v287_v14 }
  0x95   :  { %v114_v5 = vpop.f32.mrf.mxu0 }
  0x96   :  { %v115_v7 = vadd.f32 %v298_v6, %v114_v5 }
  0x98   :  { %v119_v10 = vmax.f32 %v115_v7, 0.0 }
  0x9d   :  { %v116_v8 = vpop.f32.mrf.mxu0 }
  0x9e   :  { %v117_v9 = vadd.f32 %v298_v6, %v116_v8 }
  0xa0   :  { %v120_v11 = vmax.f32 %v117_v9, 0.0 }
  0xa2   :  { %v121_v12 = vpack.c.bf16 %v120_v11, %v119_v10 }
  0xa4   :  { %274 = vmatmul.msk.bf16.vlgmr.msra.gmra.mxu1 %vm142_vm2, %v121_v12 }
 0x121   :  { %v155_v15 = vpop.f32.mrf.mxu1 }
 0x122   :  { %v156_v17 = vadd.f32 %v299_v16, %v155_v15 }
 0x124   :  { %v160_v20 = vmax.f32 %v156_v17, 0.0 }
 0x129   :  { %v157_v18 = vpop.f32.mrf.mxu1 }
 0x12a   :  { %v158_v19 = vadd.f32 %v299_v16, %v157_v18 }
 0x12c   :  { %v161_v21 = vmax.f32 %v158_v19, 0.0 }
 0x12e   :  { %v162_v22 = vpack.c.bf16 %v161_v21, %v160_v20 }
 0x130   :  { %283 = vmatmul.msk.bf16.vlgmr.msra.gmra.mxu2 %vm142_vm2, %v162_v22 }
 0x1b3   :  { %v195_v24 = vpop.f32.mrf.mxu2 }
 0x1b4   :  { %v196_v25 = vadd.f32 %v300_v23, %v195_v24 }
 0x1b6   :  { %v200_v26 = vsub.f32 0.0, %v196_v25 }
 0x1b8   :  { %v202_v27 = vmul.f32 1.442695, %v200_v26 }
 0x1ba   :  { %301 = vpow2.f32 %v202_v27 }
 0x1bb   :  { %v197_v28 = vpop.f32.mrf.mxu2 }
 0x1bc   :  { %v198_v29 = vadd.f32 %v300_v23, %v197_v28 }
 0x1be   :  { %v201_v30 = vsub.f32 0.0, %v198_v29 }
 0x1c0   :  { %v302_v31 = vpop.eup %301  ;;  %v204_v32 = vmul.f32 1.442695, %v201_v30 }
 0x1c1   :  { %v206_v33 = vadd.f32 1.0, %v302_v31 }
 0x1c2   :  { %303 = vpow2.f32 %v204_v32 }
 0x1c3   :  { %305 = vrcp.f32 %v206_v33  ;;  %v219_v39 = vand.u32 2147483648, %v206_v33  ;;  %v217_v41 = vand.u32 2147483647, %v206_v33  ;;  %vm213_vm4 = vweird.f32 %v206_v33 }
 0x1c5   :  { %v220_v44 = vor.u32 1.1754944e-38, %v219_v39  ;;  %vm218_vm6 = vcmp.eq.f32.partialorder %v217_v41, 8.507059e+37 }
 0x1c8   :  { %v304_v34 = vpop.eup %303 }
 0x1c9   :  { %v306_v35 = vpop.eup %305  ;;  %v207_v36 = vadd.f32 1.0, %v304_v34 }
 0x1ca   :  { %v209_v37 = vmul.f32 %v306_v35, %v206_v33  ;;  %vm214_vm3 = vweird.f32 %v306_v35 }
 0x1cb   :  { %307 = vrcp.f32 %v207_v36  ;;  %vm215_vm5 = vmor %vm213_vm4, %vm214_vm3  ;;  %v234_v49 = vand.u32 2147483648, %v207_v36  ;;  %v232_v51 = vand.u32 2147483647, %v207_v36  ;;  %vm228_vm8 = vweird.f32 %v207_v36 }
 0x1cc   :  { %v210_v38 = vsub.f32 1.0, %v209_v37 }
 0x1cd   :  { %v235_v53 = vor.u32 1.1754944e-38, %v234_v49  ;;  %vm233_vm10 = vcmp.eq.f32.partialorder %v232_v51, 8.507059e+37 }
 0x1ce   :  { %v211_v40 = vmul.f32 %v306_v35, %v210_v38 }
 0x1d0   :  { %v212_v42 = vadd.f32 %v306_v35, %v211_v40 }
 0x1d1   :  { %v308_v43 = vpop.eup %307 }
 0x1d2   :  { %v224_v45 = vmul.f32 %v308_v43, %v207_v36  ;;  %v216_v46 = vsel %vm215_vm5, %v306_v35, %v212_v42  ;;  %vm229_vm7 = vweird.f32 %v308_v43 }
 0x1d3   :  { %v221_v47 = vsel %vm218_vm6, %v220_v44, %v216_v46  ;;  %vm230_vm9 = vmor %vm228_vm8, %vm229_vm7 }
 0x1d4   :  { %v225_v48 = vsub.f32 1.0, %v224_v45  ;;  %238 = vst [vmem:[#allocation10] sm:$0xff] %v221_v47 }
 0x1d6   :  { %v226_v50 = vmul.f32 %v308_v43, %v225_v48 }
 0x1d8   :  { %v227_v52 = vadd.f32 %v308_v43, %v226_v50 }
 0x1da   :  { %v231_v54 = vsel %vm230_vm9, %v308_v43, %v227_v52 }
 0x1db   :  { %v236_v55 = vsel %vm233_vm10, %v235_v53, %v231_v54 }
 0x1dc   :  { %239 = vst [vmem:[#allocation10 + $0x8] sm:$0xff] %v236_v55 }
 0x1dd   :  { %252 = dma.vmem_to_hbm [thread:$0]  %s245_s6, 256, %s247_s28, [#allocation4], %s444_s29, %s444_s29, %s445_s30  }
 0x1de   :  { %435 = dma.done.wait [#allocation4], 256  }
 0x1df   :  { %436 = vsyncadd [#allocation4], 4294967040 }
 0x1e0   :  { %257 = vsyncpa [#allocation3], 1 }
 0x1e1   :  { %258 = vsyncpa [#allocation6], 1 }
 0x1e2   :  { %259 = vsyncpa [#allocation9], 1 }
 0x1e3   :  { %260 = vsyncpa [#allocation4], 1 }

</bundles_post_ra>
